<compile_context>
chip_gen: v7x
topology: tpu7x:2x2x1
jax: 0.10.0
libtpu: 0.0.40
codegen_flags: <defaults>
</compile_context>

<pallas_src>
import functools

import jax
import jax.numpy as jnp
from jax import lax
from jax.experimental import pallas as pl
from jax.experimental.pallas import tpu as pltpu


def _round_up(v, m):
    return (v + m - 1) // m * m


def _choose_batch_block(n, max_nb=16):
    """Largest per-step image count <= max_nb dividing n, preferring an even
    grid length so both v7x TensorCores get work."""
    divs = [d for d in range(1, min(n, max_nb) + 1) if n % d == 0]
    even = [d for d in divs if (n // d) % 2 == 0]
    return max(even) if even else max(divs)


def fire_kernel(x_ref, wsq_ref, bsq_ref, w1_ref, b1_ref, w3_ref, b3_ref,
                out_ref, *, H, W, Nb):
    # x_ref:   (Nb, Cin, H*W)    block of images; channels on sublanes, pixels on lanes
    # wsq_ref: (Csq, Cin)        bsq_ref: (Csq, 1)
    # w1_ref:  (Ce1, Csq)        b1_ref:  (Ce1, 1)
    # w3_ref:  (Ce3, 9*Csq)      b3_ref:  (Ce3, 1)   (columns: ky-major, kx, c)
    # out_ref: (Nb, Ce1+Ce3, H*W) fused NCHW output (channels [0:Ce1) = expand1x1)
    Csq = wsq_ref.shape[0]
    HW = H * W

    # Weights stay resident in vregs/VMEM across the whole image block.
    wsq = wsq_ref[...]
    bsq = bsq_ref[...]
    w1 = w1_ref[...]
    b1 = b1_ref[...]
    w3 = w3_ref[...]
    b3 = b3_ref[...]

    # --- hoisted edge masks (shared by all 9 taps and all Nb images) --------
    lane = jax.lax.broadcasted_iota(jnp.int32, (Csq, HW), 1)   # flat pixel idx
    if (W & (W - 1)) == 0:
        col = jnp.bitwise_and(lane, W - 1)                     # x coord, W pow-2
    else:
        col = lane % jnp.int32(W)                              # generic fallback
    row_ok = {-1: lane >= W, 0: None, 1: lane < (H - 1) * W}
    col_ok = {-1: col >= 1, 0: None, 1: col < (W - 1)}

    def one_image(i, carry):
        x = x_ref[i].astype(jnp.float32)                       # (Cin, HW)

        # squeeze 1x1 conv + ReLU:  (Csq, Cin) @ (Cin, HW)
        s = jnp.dot(wsq, x, preferred_element_type=jnp.float32) + bsq
        s = jnp.maximum(s, 0.0)                                # (Csq, HW)

        # expand1x1 conv + ReLU:  (Ce1, Csq) @ (Csq, HW)
        o1 = jnp.dot(w1, s, preferred_element_type=jnp.float32) + b1
        o1 = jnp.maximum(o1, 0.0)                              # (Ce1, HW)

        # expand3x3 conv (padding=1) + ReLU as one im2col matmul, K = 9*Csq.
        # The 9 taps are circular lane-rolls of s with the halo zeroed by the
        # hoisted masks; the patch stays in registers (no VMEM scratch).
        taps = []
        for t in range(9):
            dy, dx = t // 3 - 1, t % 3 - 1
            if dy == 0 and dx == 0:
                taps.append(s)
                continue
            shift = (-(dy * W + dx)) % HW                      # tap[l] = s[l + d]
            shifted = pltpu.roll(s, shift, axis=1)
            m = row_ok[dy]
            if col_ok[dx] is not None:
                m = col_ok[dx] if m is None else (m & col_ok[dx])
            taps.append(jnp.where(m, shifted, 0.0))
        patch = jnp.concatenate(taps, axis=0)                  # (9*Csq, HW)

        o3 = jnp.dot(w3, patch, preferred_element_type=jnp.float32) + b3
        o3 = jnp.maximum(o3, 0.0)                              # (Ce3, HW)

        # One lane-dense store per image: channels [0:Ce1)=expand1x1, rest=expand3x3.
        out_ref[i] = jnp.concatenate([o1, o3], axis=0).astype(out_ref.dtype)
        return carry

    lax.fori_loop(0, Nb, one_image, 0, unroll=True)


@jax.jit
def fire_ensemble(x_nchw, params):
    """Pallas implementation of Fire_ensemble.forward. Input/output are NCHW."""
    wsq, bsq, w1, b1, w3, b3 = params                 # PyTorch Conv2d layouts
    N, Cin, H, W = x_nchw.shape
    Csq = wsq.shape[0]
    Ce1 = w1.shape[0]
    Ce3 = w3.shape[0]
    HW = H * W

    # --- channel alignment guard: pad Csq/Ce1/Ce3 up to sublane multiples ---
    Csq_p = _round_up(Csq, 8)
    Ce1_p = _round_up(Ce1, 8)
    Ce3_p = _round_up(Ce3, 8)
    Cout_p = Ce1_p + Ce3_p

    def pad_oi(w, o_p, i_p):
        o, i = w.shape[0], w.shape[1]
        return jnp.pad(w, ((0, o_p - o), (0, i_p - i)) + ((0, 0),) * (w.ndim - 2))

    # Host-side (tiny, one-time) relayout of weights into kernel form.
    wsq_k = pad_oi(wsq.reshape(Csq, Cin), Csq_p, Cin).astype(jnp.float32)       # (Csq_p, Cin)
    w1_k = pad_oi(w1.reshape(Ce1, Csq), Ce1_p, Csq_p).astype(jnp.float32)       # (Ce1_p, Csq_p)
    w3_p = pad_oi(w3, Ce3_p, Csq_p)                                             # (Ce3_p, Csq_p, 3, 3)
    w3_k = jnp.transpose(w3_p, (0, 2, 3, 1)).reshape(Ce3_p, 9 * Csq_p)          # (Ce3_p, 9*Csq_p)
    w3_k = w3_k.astype(jnp.float32)
    bsq_k = jnp.pad(bsq, (0, Csq_p - Csq)).reshape(Csq_p, 1).astype(jnp.float32)
    b1_k = jnp.pad(b1, (0, Ce1_p - Ce1)).reshape(Ce1_p, 1).astype(jnp.float32)
    b3_k = jnp.pad(b3, (0, Ce3_p - Ce3)).reshape(Ce3_p, 1).astype(jnp.float32)

    x = x_nchw.reshape(N, Cin, HW)                    # free contiguous flatten

    # Batch Nb images per grid step (amortizes ~0.35 us/step overhead, makes
    # DMAs bigger); keep grid length even when possible for v7x's 2 TCs.
    Nb = _choose_batch_block(N)
    grid = (N // Nb,)

    kernel = functools.partial(fire_kernel, H=H, W=W, Nb=Nb)

    grid_spec = pltpu.PrefetchScalarGridSpec(
        num_scalar_prefetch=0,
        grid=grid,
        in_specs=[
            pl.BlockSpec((Nb, Cin, HW), lambda n: (n, 0, 0)),
            pl.BlockSpec((Csq_p, Cin), lambda n: (0, 0)),
            pl.BlockSpec((Csq_p, 1), lambda n: (0, 0)),
            pl.BlockSpec((Ce1_p, Csq_p), lambda n: (0, 0)),
            pl.BlockSpec((Ce1_p, 1), lambda n: (0, 0)),
            pl.BlockSpec((Ce3_p, 9 * Csq_p), lambda n: (0, 0)),
            pl.BlockSpec((Ce3_p, 1), lambda n: (0, 0)),
        ],
        out_specs=pl.BlockSpec((Nb, Cout_p, HW), lambda n: (n, 0, 0)),
    )

    out = pl.pallas_call(
        kernel,
        out_shape=jax.ShapeDtypeStruct((N, Cout_p, HW), x_nchw.dtype),
        grid_spec=grid_spec,
        compiler_params=pltpu.CompilerParams(dimension_semantics=("parallel",)),
    )(x, wsq_k, bsq_k, w1_k, b1_k, w3_k, b3_k)

    out = out.reshape(N, Cout_p, H, W)                # free contiguous unflatten
    if Ce1_p != Ce1 or Ce3_p != Ce3:
        # slice off the alignment padding (no-op for standard Fire configs)
        out = jnp.concatenate([out[:, :Ce1], out[:, Ce1_p:Ce1_p + Ce3]], axis=1)
    return out


def init_params(key, inplanes, squeeze_planes, expand1x1_planes, expand3x3_planes):
    """Deterministic synthetic parameters in PyTorch nn.Conv2d layouts."""
    ks = jax.random.split(key, 6)
    wsq = 0.2 * jax.random.normal(ks[0], (squeeze_planes, inplanes, 1, 1), jnp.float32)
    bsq = 0.1 * jax.random.normal(ks[1], (squeeze_planes,), jnp.float32)
    w1 = 0.2 * jax.random.normal(ks[2], (expand1x1_planes, squeeze_planes, 1, 1), jnp.float32)
    b1 = 0.1 * jax.random.normal(ks[3], (expand1x1_planes,), jnp.float32)
    w3 = 0.2 * jax.random.normal(ks[4], (expand3x3_planes, squeeze_planes, 3, 3), jnp.float32)
    b3 = 0.1 * jax.random.normal(ks[5], (expand3x3_planes,), jnp.float32)
    return wsq, bsq, w1, b1, w3, b3


def fire_reference(x_nchw, params):
    """Pure-JAX reference of the same forward pass (for verification)."""
    wsq, bsq, w1, b1, w3, b3 = params
    dn = ("NCHW", "OIHW", "NCHW")
    prec = jax.lax.Precision.HIGHEST
    s = jax.lax.conv_general_dilated(x_nchw, wsq, (1, 1), "VALID",
                                     dimension_numbers=dn, precision=prec)
    s = jnp.maximum(s + bsq[None, :, None, None], 0.0)
    o1 = jax.lax.conv_general_dilated(s, w1, (1, 1), "VALID",
                                      dimension_numbers=dn, precision=prec)
    o1 = jnp.maximum(o1 + b1[None, :, None, None], 0.0)
    o3 = jax.lax.conv_general_dilated(s, w3, (1, 1), "SAME",
                                      dimension_numbers=dn, precision=prec)
    o3 = jnp.maximum(o3 + b3[None, :, None, None], 0.0)
    return jnp.concatenate([o1, o3], axis=1)


if __name__ == "__main__":
    # Fire_ensemble(inplanes=4, squeeze_planes=8, expand1x1=16, expand3x3=16)
    N, Cin, H, W = 2, 4, 16, 16
    Csq, Ce1, Ce3 = 8, 16, 16

    key = jax.random.PRNGKey(0)
    kx, kp = jax.random.split(key)
    x = jax.random.normal(kx, (N, Cin, H, W), jnp.float32)
    params = init_params(kp, Cin, Csq, Ce1, Ce3)

    out = jax.block_until_ready(fire_ensemble(x, params))

    expected_shape = (N, Ce1 + Ce3, H, W)
    assert out.shape == expected_shape, (out.shape, expected_shape)

    ref = fire_reference(x, params)
    assert jnp.allclose(out, ref, atol=1e-4, rtol=1e-4), "mismatch vs reference"

    print("KERNEL_OK")
</pallas_src>

<mosaic_0001>
module attributes {stable_mosaic.version = 11 : i64} {
  func.func @fire_kernel(%arg0: i32, %arg1: memref<1x4x256xf32, #tpu.memory_space<vmem>>, %arg2: memref<8x4xf32, #tpu.memory_space<vmem>>, %arg3: memref<8x1xf32, #tpu.memory_space<vmem>>, %arg4: memref<16x8xf32, #tpu.memory_space<vmem>>, %arg5: memref<16x1xf32, #tpu.memory_space<vmem>>, %arg6: memref<16x72xf32, #tpu.memory_space<vmem>>, %arg7: memref<16x1xf32, #tpu.memory_space<vmem>>, %arg8: memref<1x32x256xf32, #tpu.memory_space<vmem>>) attributes {dimension_semantics = [#tpu.dimension_semantics<parallel>], iteration_bounds = array<i64: 2>, scalar_prefetch = 0 : i64, scratch_operands = 0 : i64, tpu.core_type = #tpu.core_type<tc>, window_params = [{transform_indices = @transform_0, window_bounds = array<i64: 1, 4, 256>}, {pipeline_mode = #tpu.pipeline_mode<synchronous>, transform_indices = @transform_1, window_bounds = array<i64: 8, 4>}, {pipeline_mode = #tpu.pipeline_mode<synchronous>, transform_indices = @transform_2, window_bounds = array<i64: 8, 1>}, {pipeline_mode = #tpu.pipeline_mode<synchronous>, transform_indices = @transform_3, window_bounds = array<i64: 16, 8>}, {pipeline_mode = #tpu.pipeline_mode<synchronous>, transform_indices = @transform_4, window_bounds = array<i64: 16, 1>}, {pipeline_mode = #tpu.pipeline_mode<synchronous>, transform_indices = @transform_5, window_bounds = array<i64: 16, 72>}, {pipeline_mode = #tpu.pipeline_mode<synchronous>, transform_indices = @transform_6, window_bounds = array<i64: 16, 1>}, {transform_indices = @transform_7, window_bounds = array<i64: 1, 32, 256>}]} {
    %c0 = arith.constant 0 : index
    %c0_0 = arith.constant 0 : index
    %0 = vector.load %arg2[%c0, %c0_0] : memref<8x4xf32, #tpu.memory_space<vmem>>, vector<8x4xf32>
    %c0_1 = arith.constant 0 : index
    %c0_2 = arith.constant 0 : index
    %1 = vector.load %arg3[%c0_1, %c0_2] : memref<8x1xf32, #tpu.memory_space<vmem>>, vector<8x1xf32>
    %c0_3 = arith.constant 0 : index
    %c0_4 = arith.constant 0 : index
    %2 = vector.load %arg4[%c0_3, %c0_4] : memref<16x8xf32, #tpu.memory_space<vmem>>, vector<16x8xf32>
    %c0_5 = arith.constant 0 : index
    %c0_6 = arith.constant 0 : index
    %3 = vector.load %arg5[%c0_5, %c0_6] : memref<16x1xf32, #tpu.memory_space<vmem>>, vector<16x1xf32>
    %c0_7 = arith.constant 0 : index
    %c0_8 = arith.constant 0 : index
    %4 = vector.load %arg6[%c0_7, %c0_8] : memref<16x72xf32, #tpu.memory_space<vmem>>, vector<16x72xf32>
    %c0_9 = arith.constant 0 : index
    %c0_10 = arith.constant 0 : index
    %5 = vector.load %arg7[%c0_9, %c0_10] : memref<16x1xf32, #tpu.memory_space<vmem>>, vector<16x1xf32>
    %6 = tpu.iota {dimensions = array<i32: 1>} : vector<8x256xi32>
    %c15_i32 = arith.constant 15 : i32
    %7 = vector.broadcast %c15_i32 : i32 to vector<8x256xi32>
    %8 = arith.andi %6, %7 : vector<8x256xi32>
    %c16_i32 = arith.constant 16 : i32
    %9 = vector.broadcast %c16_i32 : i32 to vector<8x256xi32>
    %10 = arith.cmpi sge, %6, %9 : vector<8x256xi32>
    %c240_i32 = arith.constant 240 : i32
    %11 = vector.broadcast %c240_i32 : i32 to vector<8x256xi32>
    %12 = arith.cmpi slt, %6, %11 : vector<8x256xi32>
    %c1_i32 = arith.constant 1 : i32
    %13 = vector.broadcast %c1_i32 : i32 to vector<8x256xi32>
    %14 = arith.cmpi sge, %8, %13 : vector<8x256xi32>
    %c15_i32_11 = arith.constant 15 : i32
    %15 = vector.broadcast %c15_i32_11 : i32 to vector<8x256xi32>
    %16 = arith.cmpi slt, %8, %15 : vector<8x256xi32>
    %c0_i32 = arith.constant 0 : i32
    %17 = arith.index_cast %c0_i32 : i32 to index
    %c0_12 = arith.constant 0 : index
    %c0_13 = arith.constant 0 : index
    %18 = vector.load %arg1[%17, %c0_12, %c0_13] : memref<1x4x256xf32, #tpu.memory_space<vmem>>, vector<1x4x256xf32>
    %19 = vector.shape_cast %18 : vector<1x4x256xf32> to vector<4x256xf32>
    %cst = arith.constant dense<0.000000e+00> : vector<8x256xf32>
    %20 = tpu.matmul %0, %19, %cst {dimension_numbers = #tpu.dot_dimension_numbers<[1], [0], [0], [1], [0, 0, 1, 1], [], []>} : vector<8x4xf32>, vector<4x256xf32>, vector<8x256xf32> -> vector<8x256xf32>
    %21 = vector.broadcast %1 : vector<8x1xf32> to vector<8x256xf32>
    %22 = arith.addf %20, %21 : vector<8x256xf32>
    %cst_14 = arith.constant 0.000000e+00 : f32
    %23 = vector.broadcast %cst_14 : f32 to vector<8x256xf32>
    %24 = arith.maximumf %22, %23 : vector<8x256xf32>
    %cst_15 = arith.constant dense<0.000000e+00> : vector<16x256xf32>
    %25 = tpu.matmul %2, %24, %cst_15 {dimension_numbers = #tpu.dot_dimension_numbers<[1], [0], [0], [1], [0, 0, 1, 1], [], []>} : vector<16x8xf32>, vector<8x256xf32>, vector<16x256xf32> -> vector<16x256xf32>
    %26 = vector.broadcast %3 : vector<16x1xf32> to vector<16x256xf32>
    %27 = arith.addf %25, %26 : vector<16x256xf32>
    %cst_16 = arith.constant 0.000000e+00 : f32
    %28 = vector.broadcast %cst_16 : f32 to vector<16x256xf32>
    %29 = arith.maximumf %27, %28 : vector<16x256xf32>
    %c17_i32 = arith.constant 17 : i32
    %30 = tpu.dynamic_rotate %24 by %c17_i32 dim 1 : vector<8x256xf32>, i32 -> vector<8x256xf32>
    %31 = arith.andi %10, %14 : vector<8x256xi1>
    %cst_17 = arith.constant 0.000000e+00 : f32
    %32 = vector.broadcast %cst_17 : f32 to vector<8x256xf32>
    %33 = arith.select %31, %30, %32 : vector<8x256xi1>, vector<8x256xf32>
    %c16_i32_18 = arith.constant 16 : i32
    %34 = tpu.dynamic_rotate %24 by %c16_i32_18 dim 1 : vector<8x256xf32>, i32 -> vector<8x256xf32>
    %cst_19 = arith.constant 0.000000e+00 : f32
    %35 = vector.broadcast %cst_19 : f32 to vector<8x256xf32>
    %36 = arith.select %10, %34, %35 : vector<8x256xi1>, vector<8x256xf32>
    %c15_i32_20 = arith.constant 15 : i32
    %37 = tpu.dynamic_rotate %24 by %c15_i32_20 dim 1 : vector<8x256xf32>, i32 -> vector<8x256xf32>
    %38 = arith.andi %10, %16 : vector<8x256xi1>
    %cst_21 = arith.constant 0.000000e+00 : f32
    %39 = vector.broadcast %cst_21 : f32 to vector<8x256xf32>
    %40 = arith.select %38, %37, %39 : vector<8x256xi1>, vector<8x256xf32>
    %c1_i32_22 = arith.constant 1 : i32
    %41 = tpu.dynamic_rotate %24 by %c1_i32_22 dim 1 : vector<8x256xf32>, i32 -> vector<8x256xf32>
    %cst_23 = arith.constant 0.000000e+00 : f32
    %42 = vector.broadcast %cst_23 : f32 to vector<8x256xf32>
    %43 = arith.select %14, %41, %42 : vector<8x256xi1>, vector<8x256xf32>
    %c255_i32 = arith.constant 255 : i32
    %44 = tpu.dynamic_rotate %24 by %c255_i32 dim 1 : vector<8x256xf32>, i32 -> vector<8x256xf32>
    %cst_24 = arith.constant 0.000000e+00 : f32
    %45 = vector.broadcast %cst_24 : f32 to vector<8x256xf32>
    %46 = arith.select %16, %44, %45 : vector<8x256xi1>, vector<8x256xf32>
    %c241_i32 = arith.constant 241 : i32
    %47 = tpu.dynamic_rotate %24 by %c241_i32 dim 1 : vector<8x256xf32>, i32 -> vector<8x256xf32>
    %48 = arith.andi %12, %14 : vector<8x256xi1>
    %cst_25 = arith.constant 0.000000e+00 : f32
    %49 = vector.broadcast %cst_25 : f32 to vector<8x256xf32>
    %50 = arith.select %48, %47, %49 : vector<8x256xi1>, vector<8x256xf32>
    %c240_i32_26 = arith.constant 240 : i32
    %51 = tpu.dynamic_rotate %24 by %c240_i32_26 dim 1 : vector<8x256xf32>, i32 -> vector<8x256xf32>
    %cst_27 = arith.constant 0.000000e+00 : f32
    %52 = vector.broadcast %cst_27 : f32 to vector<8x256xf32>
    %53 = arith.select %12, %51, %52 : vector<8x256xi1>, vector<8x256xf32>
    %c239_i32 = arith.constant 239 : i32
    %54 = tpu.dynamic_rotate %24 by %c239_i32 dim 1 : vector<8x256xf32>, i32 -> vector<8x256xf32>
    %55 = arith.andi %12, %16 : vector<8x256xi1>
    %cst_28 = arith.constant 0.000000e+00 : f32
    %56 = vector.broadcast %cst_28 : f32 to vector<8x256xf32>
    %57 = arith.select %55, %54, %56 : vector<8x256xi1>, vector<8x256xf32>
    %58 = tpu.concatenate %33, %36, %40, %43, %24, %46, %50, %53, %57 in 0 : vector<8x256xf32>, vector<8x256xf32>, vector<8x256xf32>, vector<8x256xf32>, vector<8x256xf32>, vector<8x256xf32>, vector<8x256xf32>, vector<8x256xf32>, vector<8x256xf32> -> vector<72x256xf32>
    %cst_29 = arith.constant dense<0.000000e+00> : vector<16x256xf32>
    %59 = tpu.matmul %4, %58, %cst_29 {dimension_numbers = #tpu.dot_dimension_numbers<[1], [0], [0], [1], [0, 0, 1, 1], [], []>} : vector<16x72xf32>, vector<72x256xf32>, vector<16x256xf32> -> vector<16x256xf32>
    %60 = vector.broadcast %5 : vector<16x1xf32> to vector<16x256xf32>
    %61 = arith.addf %59, %60 : vector<16x256xf32>
    %cst_30 = arith.constant 0.000000e+00 : f32
    %62 = vector.broadcast %cst_30 : f32 to vector<16x256xf32>
    %63 = arith.maximumf %61, %62 : vector<16x256xf32>
    %64 = tpu.concatenate %29, %63 in 0 : vector<16x256xf32>, vector<16x256xf32> -> vector<32x256xf32>
    %65 = arith.index_cast %c0_i32 : i32 to index
    %c0_31 = arith.constant 0 : index
    %c0_32 = arith.constant 0 : index
    %66 = vector.load %arg8[%65, %c0_31, %c0_32] : memref<1x32x256xf32, #tpu.memory_space<vmem>>, vector<1x32x256xf32>
    %67 = vector.shape_cast %66 : vector<1x32x256xf32> to vector<32x256xf32>
    %68 = vector.shape_cast %64 : vector<32x256xf32> to vector<1x32x256xf32>
    tpu.vector_store %arg8[%65, %c0_31, %c0_32], %68 {strides = array<i32>} : memref<1x32x256xf32, #tpu.memory_space<vmem>>, vector<1x32x256xf32>,
    %c1_i32_33 = arith.constant 1 : i32
    return
  }
  func.func @transform_0(%arg0: i32) -> (i32, i32, i32) {
    %c0_i32 = arith.constant 0 : i32
    %c0_i32_0 = arith.constant 0 : i32
    %c0_i32_1 = arith.constant 0 : i32
    return %arg0, %c0_i32, %c0_i32_0 : i32, i32, i32
  }
  func.func @transform_1(%arg0: i32) -> (i32, i32) {
    %c0_i32 = arith.constant 0 : i32
    %c0_i32_0 = arith.constant 0 : i32
    %c0_i32_1 = arith.constant 0 : i32
    return %c0_i32, %c0_i32_0 : i32, i32
  }
  func.func @transform_2(%arg0: i32) -> (i32, i32) {
    %c0_i32 = arith.constant 0 : i32
    %c0_i32_0 = arith.constant 0 : i32
    %c0_i32_1 = arith.constant 0 : i32
    return %c0_i32, %c0_i32_0 : i32, i32
  }
  func.func @transform_3(%arg0: i32) -> (i32, i32) {
    %c0_i32 = arith.constant 0 : i32
    %c0_i32_0 = arith.constant 0 : i32
    %c0_i32_1 = arith.constant 0 : i32
    return %c0_i32, %c0_i32_0 : i32, i32
  }
  func.func @transform_4(%arg0: i32) -> (i32, i32) {
    %c0_i32 = arith.constant 0 : i32
    %c0_i32_0 = arith.constant 0 : i32
    %c0_i32_1 = arith.constant 0 : i32
    return %c0_i32, %c0_i32_0 : i32, i32
  }
  func.func @transform_5(%arg0: i32) -> (i32, i32) {
    %c0_i32 = arith.constant 0 : i32
    %c0_i32_0 = arith.constant 0 : i32
    %c0_i32_1 = arith.constant 0 : i32
    return %c0_i32, %c0_i32_0 : i32, i32
  }
  func.func @transform_6(%arg0: i32) -> (i32, i32) {
    %c0_i32 = arith.constant 0 : i32
    %c0_i32_0 = arith.constant 0 : i32
    %c0_i32_1 = arith.constant 0 : i32
    return %c0_i32, %c0_i32_0 : i32, i32
  }
  func.func @transform_7(%arg0: i32) -> (i32, i32, i32) {
    %c0_i32 = arith.constant 0 : i32
    %c0_i32_0 = arith.constant 0 : i32
    %c0_i32_1 = arith.constant 0 : i32
    return %arg0, %c0_i32, %c0_i32_0 : i32, i32, i32
  }
}

</mosaic_0001>

<bundles_post_ra>
// kernel: fire_ensemble.1
= control target key start
LH: loop header
LB: loop body
LE: loop exit
PB: predicated region body
PF: predicated region fallthrough
CT: control target
= control target key end

     0   :  { %s915_s24 = smov 0   ;;  %s1107_s0 = inlined_call_operand.vmem [shape: f32[2,4,256], index: 0, kind: input, shape index: {}]   ;;  %s1108_s1 = inlined_call_operand.vmem [shape: f32[8,4], index: 1, kind: input, shape index: {}]   ;;  %s1109_s2 = inlined_call_operand.vmem [shape: f32[8,1], index: 2, kind: input, shape index: {}]   ;;  %s1110_s3 = inlined_call_operand.vmem [shape: f32[16,8], index: 3, kind: input, shape index: {}]   ;;  %s1111_s4 = inlined_call_operand.vmem [shape: f32[16,1], index: 4, kind: input, shape index: {}]   ;;  %s1112_s5 = inlined_call_operand.vmem [shape: f32[16,72], index: 5, kind: input, shape index: {}]   ;;  %s1113_s6 = inlined_call_operand.vmem [shape: f32[16,1], index: 6, kind: input, shape index: {}]   ;;  %s1114_s7 = inlined_call_operand.vmem [shape: f32[2,32,256], index: 7, kind: output, shape index: {}]  }
   0x1 LB: > { %s731_s25 = sadd.s32 4294967295, %s862_s24   ;;  %p735_p0 = scmp.ge.s32.totalorder %s862_s24, 1  ;;  %s862_s24 = sphi %s915_s24, %s17_s24  }
   0x2   : > { %p237_p1 = scmp.lt.s32.totalorder %s862_s24, 3 }
   0x4   : > { %p238_p2 = pnand %p735_p0, %p237_p1 }
   0x5   : > { %p269_p3 = scmp.lt.s32.totalorder (!%p238_p2), %s731_s25, 1  ;;  %v864_v0 = vmov (!%p238_p2), 0.0   ;;  %v865_v1 = vmov (!%p238_p2), 0   ;;  %v280_v2 = vld [vmem:[%s1109_s2] sm:$0xff] (!%p238_p2)  ;;  %vm314_vm0 = vcmask (!%p238_p2), 1043456   ;;  %vm310_vm1 = vcmask (!%p238_p2), 31744  }
   0x6   : > { %241 = sbr.rel (%p238_p2) target bundleno = 597 (0x255), region = 48  ;;  %383 = vmatprep.mubr.f32.mxu0 (!%p238_p2), %v864_v0  ;;  %818 = vset.pattern.permute.xlu0 (!%p238_p2), %v865_v1  ;;  %v279_v5 = vld [vmem:[%s1108_s1] sm:$0xff] (!%p238_p2)  ;;  %vm402_vm2 = vcmask (!%p238_p2), 64512   ;;  %s866_s13 = smov (!%p238_p2), 16   ;;  %v282_v15 = vld [vmem:[%s1110_s3 + $0x8] sm:$0xff] (!%p238_p2)  ;;  %v289_v20 = vlaneseq (!%p238_p2)  ;;  %vm874_vm11 = vmmov (!%p238_p2), 1  }
   0x7   : > { %305 = vperm.xlu0 (!%p238_p2), %818, %v280_v2   ;;  %473 = vmatprep.mubr.f32.mxu1 (!%p238_p2), %v864_v0  ;;  %v281_v14 = vld [vmem:[%s1110_s3] sm:$0xff] (!%p238_p2)  ;;  %s867_s14 = smov (!%p238_p2), 17   ;;  %s868_s15 = smov (!%p238_p2), 15   ;;  %v284_v18 = vld [vmem:[%s1111_s4 + $0x8] sm:$0xff] (!%p238_p2) }
   0x8   : > { %854 = vset.pattern.permute.xlu1 (!%p238_p2), %v865_v1  ;;  %s869_s16 = smov (!%p238_p2), 1   ;;  %s870_s19 = smov (!%p238_p2), 127   ;;  %v283_v16 = vld [vmem:[%s1111_s4] sm:$0xff] (!%p238_p2)  ;;  %v288_v19 = vld [vmem:[%s1113_s6 + $0x8] sm:$0xff] (!%p238_p2)  ;;  %v963_v21 = vand.u32 (!%p238_p2), 127, %v289_v20 }
   0x9   : > { %s871_s20 = smov (!%p238_p2), 113   ;;  %s872_s21 = smov (!%p238_p2), 112   ;;  %v287_v17 = vld [vmem:[%s1113_s6] sm:$0xff] (!%p238_p2) }
   0xa   : > { %s873_s22 = smov (!%p238_p2), 111   ;;  %v966_v22 = vadd.s32 (!%p238_p2), 128, %v963_v21  ;;  %v292_v23 = vand.u32 (!%p238_p2), 15, %v963_v21  ;;  %vm294_vm3 = vcmp.ge.s32.totalorder (!%p238_p2), %v963_v21, 16  ;;  %vm505_vm5 = vcmp.lt.s32.totalorder (!%p238_p2), %v963_v21, 16 }
   0xb   : > { %vm494_vm6 = vcmp.lt.s32.totalorder (!%p238_p2), %v963_v21, 17  ;;  %vm514_vm9 = vcmp.lt.s32.totalorder (!%p238_p2), %v963_v21, 15  ;;  %vm525_vm13 = vcmp.lt.s32.totalorder (!%p238_p2), %v963_v21, 1 }
   0xc   : > { %v293_v24 = vand.u32 (!%p238_p2), 15, %v966_v22  ;;  %vm971_vm4 = vcmp.ge.s32.totalorder (!%p238_p2), %v292_v23, 1  ;;  %vm986_vm10 = vcmp.lt.s32.totalorder (!%p238_p2), %v292_v23, 15 }
   0xd   : > { %s1132_s25 = smov (!%p269_p3, %s731_s25), 1  ;;  %vm497_vm8 = vmand %vm294_vm3, %vm971_vm4 }
   0xe   : > { %s763_s28 = sshll.u32 %s1132_s25, 3  ;;  %vm977_vm7 = vcmp.ge.s32.totalorder %v293_v24, 1  ;;  %vm996_vm14 = vmpackc.low %vm294_vm3, %vm497_vm8  ;;  %vm1000_vm15 = vcmp.lt.s32.totalorder %v293_v24, 15 }
   0xf   : > { %s273_s8 = scalar_lea.vmem %s1107_s0, %s763_s28  ;;  %vm766_vm12 = vmpackc.low %vm874_vm11, %vm977_vm7 }
  0x10   : > { %v302_v3 = vld [vmem:[%s273_s8] sm:$0xff]  ;;  %vm1045_vm8 = vmpackc.low %vm986_vm10, %vm874_vm11 }
  0x11   : > { %v309_v4 = vcombine.high %v302_v3, %v302_v3 }
  0x13   : > { %740 = vmatprep.subr.msk.mxu0 %vm314_vm0, %v309_v4 }
  0x14   : > { %741 = vmatpush1.msk.msra.mxu0 %vm314_vm0, %v302_v3  ;;  %vm1008_vm0 = vmand %vm294_vm3, %vm986_vm10 }
  0x15   : > { %742 = vmatmul.mubr.msk.f32.vlgmr.msra.gmra.mrb[0].mxu0 %vm310_vm1, %v279_v5  ;;  %vm772_vm1 = vmpackc.low %vm977_vm7, %vm1000_vm15 }
  0x16   : > { %651 = vmatprep.mubr.f32.mxu0 %v864_v0  ;;  %vm775_vm3 = vmpackc.low %vm971_vm4, %vm1008_vm0 }
  0x17   : > { %vm787_vm0 = vmpackc.low %vm874_vm11, %vm971_vm4 }
  0x86   : > { %v306_v6 = vpop.permute.xlu0 %305 }
  0xe8   : > { %v385_v7 = vpop.f32.mrb[0].mxu0 }
  0xe9   : > { %v386_v8 = vadd.f32 %v385_v7, %v306_v6  ;;  %v387_v9 = vpop.f32.mrb[1].mxu0 }
  0xea   : > { %v388_v10 = vadd.f32 %v387_v9, %v306_v6 }
  0xeb   : > { %v935_v11 = vmax.f32 %v386_v8, 0.0 }
  0xec   : > { %v937_v12 = vmax.f32 %v388_v10, 0.0 }
  0xee   : > { %409 = vmatprep.subr.mxu1 %v937_v12  ;;  %v824_v13 = vpack.i.bf16 %v937_v12, %v935_v11 }
  0xef   : > { %410 = vmatpush1.msra.mxu1 %v935_v11 }
  0xf0   : > { %825 = vrot.lane.b32.xlu1 %v824_v13, %s866_s13  ;;  %820 = vrot.lane.b32.xlu0 %v824_v13, %s867_s14  ;;  %s764_s14 = sshll.u32 %s1132_s25, 6 }
  0xf1   : > { %743 = vmatmul.mubr.msk.f32.vlgmr.msra.gmra.mrb[0].mxu1 %vm402_vm2, %v281_v14  ;;  %s1094_s17 = scalar_lea.vmem %s1114_s7, %s764_s14 }
  0xf2   : > { %479 = vmatprep.mubr.f32.mxu1 %v864_v0 }
  0xf4   : > { %830 = vrot.lane.b32.xlu1 %v824_v13, %s868_s15  ;;  %835 = vrot.lane.b32.xlu0 %v824_v13, %s869_s16 }
  0xf5   : > { %744 = vmatmul.mubr.msk.f32.gmra.mrb[2].mxu1 %vm402_vm2, %v282_v15  ;;  %vm534_vm2 = vcmp.lt.s32.totalorder %v963_v21, 127  ;;  %v285_v15 = vld [vmem:[%s1112_s5] sm:$0xff] }
  0xf6   : > { %657 = vmatprep.mubr.f32.mxu1 %v864_v0 }
  0xf8   : > { %840 = vrot.lane.b32.xlu1 %v824_v13, %s870_s19  ;;  %845 = vrot.lane.b32.xlu0 %v824_v13, %s871_s20 }
  0xfc   : > { %850 = vrot.lane.b32.xlu1 %v824_v13, %s872_s21  ;;  %559 = vrot.lane.b32.xlu0 %v935_v11, %s873_s22 }
 0x100   : > { %561 = vrot.lane.b32.xlu1 %v937_v12, %s873_s22  ;;  %394 = vperm.xlu0 %818, %v283_v16  }
 0x104   : > { %572 = vperm.xlu0 %818, %v287_v17   ;;  %399 = vperm.xlu1 %854, %v284_v18   ;;  %v286_v17 = vld [vmem:[%s1112_s5 + $0x8] sm:$0xff] }
 0x108   : > { %577 = vperm.xlu1 %854, %v288_v19  }
 0x162   : > { %v826_v26 = vpop.permute.xlu1 %825  ;;  %v821_v27 = vpop.permute.xlu0 %820 }
 0x163   : > { %v828_v29 = vunpack.i.h.bf16 %v826_v26  ;;  %v827_v30 = vunpack.i.l.bf16 %v826_v26  ;;  %v823_v31 = vunpack.i.h.bf16 %v821_v27  ;;  %v822_v32 = vunpack.i.l.bf16 %v821_v27 }
 0x165   : > { %v506_v34 = vsel %vm505_vm5, %v827_v30, %v828_v29  ;;  %v507_v35 = vsel %vm505_vm5, %v828_v29, %v827_v30  ;;  %v495_v36 = vsel %vm494_vm6, %v822_v32, %v823_v31  ;;  %v496_v37 = vsel %vm494_vm6, %v823_v31, %v822_v32  ;;  %vm1033_vm6 = vmpackc.low %vm1000_vm15, %vm874_vm11 }
 0x166   : > { %v765_v38 = vpack.c.bf16 %v506_v34, %v495_v36  ;;  %v768_v39 = vpack.c.bf16 %v507_v35, %v496_v37  ;;  %v831_v40 = vpop.permute.xlu1 %830  ;;  %v836_v41 = vpop.permute.xlu0 %835  ;;  %vm297_vm5 = vcmp.lt.s32.totalorder %v966_v22, 240 }
 0x167   : > { %v833_v44 = vunpack.i.h.bf16 %v831_v40  ;;  %v832_v45 = vunpack.i.l.bf16 %v831_v40  ;;  %v838_v46 = vunpack.i.h.bf16 %v836_v41  ;;  %v837_v47 = vunpack.i.l.bf16 %v836_v41 }
 0x168   : > { %767 = vmatprep.subr.msk.bf16.mxu0 %vm766_vm12, %v765_v38  ;;  %789 = vmatprep.subr.msk.bf16.mxu1 %vm766_vm12, %v765_v38  ;;  %vm554_vm12 = vcmp.lt.s32.totalorder %v963_v21, 112 }
 0x169   : > { %v515_v49 = vsel %vm514_vm9, %v832_v45, %v833_v44  ;;  %v516_v50 = vsel %vm514_vm9, %v833_v44, %v832_v45  ;;  %v526_v51 = vsel %vm525_vm13, %v837_v47, %v838_v46  ;;  %v527_v52 = vsel %vm525_vm13, %v838_v46, %v837_v47  ;;  %770 = vmatpush1.bf16.msk.msra.mxu0 %vm996_vm14, %v768_v39  ;;  %vm547_vm13 = vmand %vm297_vm5, %vm977_vm7 }
 0x16a   : > { %v771_v53 = vpack.c.bf16 %v526_v51, %v515_v49  ;;  %v774_v54 = vpack.c.bf16 %v527_v52, %v516_v50  ;;  %794 = vmatpush1.bf16.msk.msra.mxu1 %vm996_vm14, %v768_v39  ;;  %v841_v55 = vpop.permute.xlu1 %840  ;;  %v846_v56 = vpop.permute.xlu0 %845  ;;  %vm543_vm9 = vcmp.lt.s32.totalorder %v963_v21, 113  ;;  %vm784_vm14 = vmpackc.low %vm297_vm5, %vm547_vm13  ;;  %vm563_vm7 = vcmp.lt.s32.totalorder %v963_v21, 111 }
 0x16b   : > { %v843_v57 = vunpack.i.h.bf16 %v841_v55  ;;  %v842_v58 = vunpack.i.l.bf16 %v841_v55  ;;  %v848_v62 = vunpack.i.h.bf16 %v846_v56  ;;  %v847_v63 = vunpack.i.l.bf16 %v846_v56 }
 0x16c   : > { %773 = vmatprep.subr.msk.bf16.mxu0 %vm772_vm1, %v771_v53  ;;  %790 = vmatprep.subr.msk.bf16.mxu1 %vm772_vm1, %v771_v53  ;;  %vm567_vm1 = vmand %vm297_vm5, %vm1000_vm15 }
 0x16d   : > { %v535_v60 = vsel %vm534_vm2, %v842_v58, %v843_v57  ;;  %v536_v61 = vsel %vm534_vm2, %v843_v57, %v842_v58  ;;  %776 = vmatpush1.bf16.msk.msra.mxu0 %vm775_vm3, %v774_v54  ;;  %v544_v6 = vsel %vm543_vm9, %v847_v63, %v848_v62  ;;  %v545_v7 = vsel %vm543_vm9, %v848_v62, %v847_v63 }
 0x16e   : > { %v777_v1 = vpack.c.bf16 %v536_v61, %v937_v12  ;;  %v780_v2 = vpack.c.bf16 %v535_v60, %v935_v11  ;;  %795 = vmatpush1.bf16.msk.msra.mxu1 %vm775_vm3, %v774_v54  ;;  %v851_v3 = vpop.permute.xlu1 %850  ;;  %v560_v13 = vpop.permute.xlu0 %559  ;;  %vm580_vm2 = vcmask 588800  }
 0x16f   : > { %v853_v4 = vunpack.i.h.bf16 %v851_v3  ;;  %v852_v5 = vunpack.i.l.bf16 %v851_v3 }
 0x170   : > { %779 = vmatprep.subr.msk.bf16.mxu0 %vm1033_vm6, %v777_v1  ;;  %791 = vmatprep.subr.msk.bf16.mxu1 %vm1033_vm6, %v777_v1 }
 0x171   : > { %v555_v8 = vsel %vm554_vm12, %v852_v5, %v853_v4  ;;  %v556_v9 = vsel %vm554_vm12, %v853_v4, %v852_v5  ;;  %782 = vmatpush1.bf16.msk.msra.mxu0 %vm1045_vm8, %v780_v2 }
 0x172   : > { %v783_v10 = vpack.c.bf16 %v556_v9, %v545_v7  ;;  %v786_v11 = vpack.c.bf16 %v555_v8, %v544_v6  ;;  %796 = vmatpush1.bf16.msk.msra.mxu1 %vm1045_vm8, %v780_v2  ;;  %v562_v12 = vpop.permute.xlu1 %561 }
 0x173   : > { %v565_v14 = vsel %vm563_vm7, %v562_v12, %v560_v13  ;;  %v564_v16 = vsel %vm563_vm7, %v560_v13, %v562_v12 }
 0x174   : > { %785 = vmatprep.subr.msk.bf16.mxu0 %vm784_vm14, %v783_v10  ;;  %792 = vmatprep.subr.msk.bf16.mxu1 %vm784_vm14, %v783_v10 }
 0x175   : > { %788 = vmatpush1.bf16.msk.msra.mxu0 %vm787_vm0, %v786_v11 }
 0x176   : > { %797 = vmatpush1.bf16.msk.msra.mxu1 %vm787_vm0, %v786_v11  ;;  %757 = vmatprep.subr.msk.mxu0 %vm567_vm1, %v565_v14 }
 0x177   : > { %793 = vmatprep.subr.msk.mxu1 %vm567_vm1, %v565_v14 }
 0x179   : > { %758 = vmatpush1.msk.msra.mxu0 %vm986_vm10, %v564_v16 }
 0x17a   : > { %798 = vmatpush1.msk.msra.mxu1 %vm986_vm10, %v564_v16  ;;  %759 = vmatmul.mubr.msk.f32.vlgmr.msra.gmra.mrb[2].mxu0 %vm580_vm2, %v285_v15 }
 0x17b   : > { %760 = vmatmul.mubr.msk.f32.vlgmr.msra.gmra.mrb[4].mxu1 %vm580_vm2, %v286_v17 }
 0x17f   : > { %v395_v18 = vpop.permute.xlu0 %394 }
 0x183   : > { %v400_v25 = vpop.permute.xlu1 %399  ;;  %v573_v32 = vpop.permute.xlu0 %572 }
 0x187   : > { %v578_v33 = vpop.permute.xlu1 %577 }
 0x1c4   : > { %v475_v19 = vpop.f32.mrb[0].mxu1 }
 0x1c5   : > { %v476_v20 = vadd.f32 %v475_v19, %v395_v18  ;;  %v477_v21 = vpop.f32.mrb[1].mxu1 }
 0x1c6   : > { %v478_v22 = vadd.f32 %v477_v21, %v395_v18 }
 0x1c7   : > { %v486_v23 = vmax.f32 %v476_v20, 0.0 }
 0x1c8   : > { %v487_v24 = vmax.f32 %v478_v22, 0.0  ;;  %v481_v26 = vpop.f32.mrb[2].mxu1 }
 0x1c9   : > { %668 = vst [vmem:[%s1094_s17] sm:$0xff] %v486_v23  ;;  %v482_v27 = vadd.f32 %v481_v26, %v400_v25  ;;  %v483_v28 = vpop.f32.mrb[3].mxu1 }
 0x1ca   : > { %669 = vst [vmem:[%s1094_s17 + $0x8] sm:$0xff] %v487_v24  ;;  %v484_v29 = vadd.f32 %v483_v28, %v400_v25 }
 0x1cb   : > { %v488_v30 = vmax.f32 %v482_v27, 0.0 }
 0x1cc   : > { %v489_v31 = vmax.f32 %v484_v29, 0.0 }
 0x1cd   : > { %670 = vst [vmem:[%s1094_s17 + $0x10] sm:$0xff] %v488_v30 }
 0x1ce   : > { %671 = vst [vmem:[%s1094_s17 + $0x18] sm:$0xff] %v489_v31 }
 0x24d   : > { %v653_v34 = vpop.f32.mrb[2].mxu0 }
 0x24e   : > { %v654_v35 = vadd.f32 %v653_v34, %v573_v32  ;;  %v659_v36 = vpop.f32.mrb[4].mxu1  ;;  %v655_v37 = vpop.f32.mrb[3].mxu0 }
 0x24f   : > { %v660_v38 = vadd.f32 %v659_v36, %v578_v33  ;;  %v656_v39 = vadd.f32 %v655_v37, %v573_v32  ;;  %v661_v40 = vpop.f32.mrb[5].mxu1 }
 0x250   : > { %v664_v41 = vmax.f32 %v654_v35, 0.0  ;;  %v662_v42 = vadd.f32 %v661_v40, %v578_v33 }
 0x251   : > { %v666_v43 = vmax.f32 %v660_v38, 0.0  ;;  %v665_v44 = vmax.f32 %v656_v39, 0.0 }
 0x252   : > { %672 = vst [vmem:[%s1094_s17 + $0x20] sm:$0xff] %v664_v41  ;;  %v667_v45 = vmax.f32 %v662_v42, 0.0 }
 0x253   : > { %674 = vst [vmem:[%s1094_s17 + $0x30] sm:$0xff] %v666_v43  ;;  %673 = vst [vmem:[%s1094_s17 + $0x28] sm:$0xff] %v665_v44 }
 0x254   : > { %675 = vst [vmem:[%s1094_s17 + $0x38] sm:$0xff] %v667_v45 }
 0x255 PF: > { %s17_s24 = sadd.s32 1, %s862_s24  }
 0x256   : > { %p14_p4 = scmp.ge.s32.totalorder %s17_s24, 4  }
 0x258   :  { %16 = sbr.rel (!%p14_p4) target bundleno = 1 (0x1), region = 78 }

</bundles_post_ra>
